<compile_context>
chip_gen: v7x
topology: tpu7x:2x2x1
jax: 0.10.0
libtpu: 0.0.40
codegen_flags: <defaults>
</compile_context>

<pallas_src>
import functools

import jax
import jax.numpy as jnp
from jax.experimental import pallas as pl
from jax.experimental.pallas import tpu as pltpu


def _transition_down_kernel(xyz_ref, feat_ref, w1a_ref, w1b_ref, b1_ref,
                            w2_ref, b2_ref, o_ref):
    # One (tile, P*C) slab of packed points per grid step; weights/biases use
    # constant index_maps so they stay VMEM-resident across grid steps.
    # xyz path kept f32 (tiny K, preserves coordinate precision).
    h = jnp.dot(xyz_ref[...], w1a_ref[...], preferred_element_type=jnp.float32)
    # feature path / second layer use the weights' (possibly bf16) dtype;
    # the cast happens in-kernel (VPU filler), never as a wrapper HBM pass.
    h = h + jnp.dot(feat_ref[...].astype(w1b_ref.dtype), w1b_ref[...],
                    preferred_element_type=jnp.float32)
    h = jnp.maximum(h + b1_ref[...], 0.0)              # folded-BN bias + ReLU, f32
    y = jnp.dot(h.astype(w2_ref.dtype), w2_ref[...],
                preferred_element_type=jnp.float32)
    y = jnp.maximum(y + b2_ref[...], 0.0)
    o_ref[...] = y.astype(o_ref.dtype)


def _fold_bn(w, b, gamma, beta, mean, var, eps=1e-5):
    """Fold inference-mode BatchNorm1d into a 1x1-conv (matmul) weight/bias.

    w: [Cin, Cout], b: [Cout]; BN params: [Cout].
    y = ((x @ w + b) - mean) / sqrt(var + eps) * gamma + beta
      = x @ (w * scale) + ((b - mean) * scale + beta)
    """
    scale = gamma / jnp.sqrt(var + eps)
    return w * scale[None, :], (b - mean) * scale + beta


def _block_diag(w, p):
    """P copies of w on the diagonal: [Cin, Cout] -> [P*Cin, P*Cout]."""
    cin, cout = w.shape
    bd = jnp.zeros((p * cin, p * cout), w.dtype)
    for k in range(p):
        bd = bd.at[k * cin:(k + 1) * cin, k * cout:(k + 1) * cout].set(w)
    return bd


@functools.partial(
    jax.jit, static_argnames=("tile_m", "pack", "compute_dtype", "out_dtype"))
def transition_down(xyz, features, params, tile_m=16384, pack=8,
                    compute_dtype=jnp.bfloat16, out_dtype=jnp.float32):
    """xyz: [B, N, 3] f32, features: [B, N, D] f32 -> [B, N, out_channel]."""
    B, N, _ = xyz.shape
    D = features.shape[-1]
    M = B * N
    P = int(pack)

    # Flatten points; pad point count to a multiple of P (padded rows are
    # independent garbage and sliced away at the end).
    M_pad = ((M + P - 1) // P) * P
    xyz2d = xyz.reshape(M, 3)                 # stays f32 — no wrapper cast
    feat2d = features.reshape(M, D)
    if M_pad != M:
        xyz2d = jnp.pad(xyz2d, ((0, M_pad - M), (0, 0)))
        feat2d = jnp.pad(feat2d, ((0, M_pad - M), (0, 0)))
    rows = M_pad // P
    xyz_p = xyz2d.reshape(rows, P * 3)        # free row-major reshapes
    feat_p = feat2d.reshape(rows, P * D)

    # Fold BN into the 1x1 convs, then build P-way block-diagonal weights so
    # each packed row processes P points independently.
    w1, b1 = _fold_bn(params["w1"], params["b1"], params["bn1_gamma"],
                      params["bn1_beta"], params["bn1_mean"], params["bn1_var"])
    w2, b2 = _fold_bn(params["w2"], params["b2"], params["bn2_gamma"],
                      params["bn2_beta"], params["bn2_mean"], params["bn2_var"])
    c1 = w1.shape[1]
    c2 = w2.shape[1]

    w1a_bd = _block_diag(w1[:3, :], P).astype(jnp.float32)        # [P*3,  P*c1]
    w1b_bd = _block_diag(w1[3:, :], P).astype(compute_dtype)      # [P*D,  P*c1]
    w2_bd = _block_diag(w2, P).astype(compute_dtype)              # [P*c1, P*c2]
    b1_row = jnp.tile(b1, P).reshape(1, P * c1).astype(jnp.float32)
    b2_row = jnp.tile(b2, P).reshape(1, P * c2).astype(jnp.float32)

    # Tile over packed rows: requested tile (in points) -> rows, multiple of 8.
    tm = max(8, (max(tile_m, P) // P // 8) * 8)
    if tm >= rows:
        if rows >= 16:
            # Split into >= 2 grid steps so v7x's two TensorCores both get work
            # and the input/output DMA pipeline has something to overlap.
            tm = (((rows + 1) // 2) + 7) // 8 * 8
        else:
            tm = rows        # single full-extent block (legal: equals full dim)
    grid = (pl.cdiv(rows, tm),)

    cd_bytes = jnp.dtype(compute_dtype).itemsize
    out_bytes = jnp.dtype(out_dtype).itemsize
    weight_bytes = (w1a_bd.size * 4 + w1b_bd.size * cd_bytes
                    + w2_bd.size * cd_bytes + (P * c1 + P * c2) * 4)
    cost = pl.CostEstimate(
        flops=2 * M_pad * P * ((3 + D) * c1 + c1 * c2),
        transcendentals=0,
        bytes_accessed=(M_pad * (3 + D) * 4          # f32 point inputs
                        + weight_bytes
                        + M_pad * c2 * out_bytes))   # output

    out2d = pl.pallas_call(
        _transition_down_kernel,
        out_shape=jax.ShapeDtypeStruct((rows, P * c2), out_dtype),
        grid_spec=pltpu.PrefetchScalarGridSpec(
            num_scalar_prefetch=0,
            grid=grid,
            in_specs=[
                pl.BlockSpec((tm, P * 3), lambda i: (i, 0)),       # xyz tile
                pl.BlockSpec((tm, P * D), lambda i: (i, 0)),       # feature tile
                pl.BlockSpec((P * 3, P * c1), lambda i: (0, 0)),   # W1a (resident)
                pl.BlockSpec((P * D, P * c1), lambda i: (0, 0)),   # W1b (resident)
                pl.BlockSpec((1, P * c1), lambda i: (0, 0)),       # b1
                pl.BlockSpec((P * c1, P * c2), lambda i: (0, 0)),  # W2 (resident)
                pl.BlockSpec((1, P * c2), lambda i: (0, 0)),       # b2
            ],
            out_specs=pl.BlockSpec((tm, P * c2), lambda i: (i, 0)),
        ),
        compiler_params=pltpu.CompilerParams(
            dimension_semantics=("parallel",),
            vmem_limit_bytes=32 * 1024 * 1024),
        cost_estimate=cost,
    )(xyz_p, feat_p, w1a_bd, w1b_bd, b1_row, w2_bd, b2_row)

    out = out2d.reshape(M_pad, c2)
    if M_pad != M:
        out = out[:M]
    return out.reshape(B, N, c2)


def make_params(key, in_channel, internal_channel, out_channel):
    """Deterministic synthetic parameters matching TransitionDown.__init__."""
    ks = jax.random.split(key, 8)
    # Conv1d(in, internal, 1): weight [internal, in, 1] -> store as [in, internal]
    w1 = jax.random.normal(ks[0], (in_channel, internal_channel), jnp.float32) * 0.1
    b1 = jax.random.normal(ks[1], (internal_channel,), jnp.float32) * 0.1
    w2 = jax.random.normal(ks[2], (internal_channel, out_channel), jnp.float32) * 0.1
    b2 = jax.random.normal(ks[3], (out_channel,), jnp.float32) * 0.1
    # BatchNorm1d params (inference-mode running stats, deterministic)
    # TODO(synk): training-mode BN (batch statistics) is not implemented; eval-mode BN is used.
    bn1_gamma = 1.0 + 0.1 * jax.random.normal(ks[4], (internal_channel,), jnp.float32)
    bn1_beta = 0.1 * jax.random.normal(ks[5], (internal_channel,), jnp.float32)
    bn1_mean = 0.05 * jnp.arange(internal_channel, dtype=jnp.float32)
    bn1_var = 1.0 + 0.02 * jnp.arange(internal_channel, dtype=jnp.float32)
    bn2_gamma = 1.0 + 0.1 * jax.random.normal(ks[6], (out_channel,), jnp.float32)
    bn2_beta = 0.1 * jax.random.normal(ks[7], (out_channel,), jnp.float32)
    bn2_mean = 0.03 * jnp.arange(out_channel, dtype=jnp.float32)
    bn2_var = 1.0 + 0.01 * jnp.arange(out_channel, dtype=jnp.float32)
    return dict(w1=w1, b1=b1, w2=w2, b2=b2,
                bn1_gamma=bn1_gamma, bn1_beta=bn1_beta,
                bn1_mean=bn1_mean, bn1_var=bn1_var,
                bn2_gamma=bn2_gamma, bn2_beta=bn2_beta,
                bn2_mean=bn2_mean, bn2_var=bn2_var)


def _reference(xyz, features, params, eps=1e-5):
    """Pure-JAX f32 reference of the (eval-mode) forward pass."""
    x = jnp.concatenate([xyz, features], axis=-1)
    h = x @ params["w1"] + params["b1"]
    h = (h - params["bn1_mean"]) / jnp.sqrt(params["bn1_var"] + eps) \
        * params["bn1_gamma"] + params["bn1_beta"]
    h = jnp.maximum(h, 0.0)
    y = h @ params["w2"] + params["b2"]
    y = (y - params["bn2_mean"]) / jnp.sqrt(params["bn2_var"] + eps) \
        * params["bn2_gamma"] + params["bn2_beta"]
    y = jnp.maximum(y, 0.0)
    return y


if __name__ == "__main__":
    B, N, D = 2, 16, 4              # xyz: [B, N, 3], features: [B, N, D]
    in_channel = 3 + D              # = 7
    internal_channel = 32
    out_channel = 32

    key = jax.random.PRNGKey(0)
    k_xyz, k_feat, k_params = jax.random.split(key, 3)
    xyz = jax.random.normal(k_xyz, (B, N, 3), jnp.float32)
    features = jax.random.normal(k_feat, (B, N, D), jnp.float32)
    params = make_params(k_params, in_channel, internal_channel, out_channel)

    ref = _reference(xyz, features, params)

    # 1) f32 compute path: tight-tolerance check vs. the f32 reference.
    out_f32 = transition_down(xyz, features, params, compute_dtype=jnp.float32)
    out_f32 = jax.block_until_ready(out_f32)
    assert out_f32.shape == (B, N, out_channel), out_f32.shape
    assert jnp.allclose(out_f32, ref, atol=1e-5, rtol=1e-5), \
        float(jnp.max(jnp.abs(out_f32 - ref)))

    # 2) default bf16 compute path (xyz stays f32; looser tolerance).
    out_bf16 = transition_down(xyz, features, params)
    out_bf16 = jax.block_until_ready(out_bf16)
    assert out_bf16.shape == (B, N, out_channel), out_bf16.shape
    assert jnp.allclose(out_bf16, ref, atol=5e-2, rtol=5e-2), \
        float(jnp.max(jnp.abs(out_bf16 - ref)))

    # 3) non-multiple-of-pack point count exercises the padding path.
    N2 = 13
    xyz2 = jax.random.normal(k_xyz, (B, N2, 3), jnp.float32)
    feat2 = jax.random.normal(k_feat, (B, N2, D), jnp.float32)
    ref2 = _reference(xyz2, feat2, params)
    out2 = transition_down(xyz2, feat2, params, compute_dtype=jnp.float32)
    out2 = jax.block_until_ready(out2)
    assert out2.shape == (B, N2, out_channel), out2.shape
    assert jnp.allclose(out2, ref2, atol=1e-5, rtol=1e-5), \
        float(jnp.max(jnp.abs(out2 - ref2)))

    print("KERNEL_OK")
</pallas_src>

<mosaic_0001>
module attributes {stable_mosaic.version = 11 : i64} {
  func.func @_transition_down_kernel(%arg0: i32, %arg1: memref<4x24xf32, #tpu.memory_space<vmem>>, %arg2: memref<4x32xf32, #tpu.memory_space<vmem>>, %arg3: memref<24x256xf32, #tpu.memory_space<vmem>>, %arg4: memref<32x256xf32, #tpu.memory_space<vmem>>, %arg5: memref<1x256xf32, #tpu.memory_space<vmem>>, %arg6: memref<256x256xf32, #tpu.memory_space<vmem>>, %arg7: memref<1x256xf32, #tpu.memory_space<vmem>>, %arg8: memref<4x256xf32, #tpu.memory_space<vmem>>) attributes {dimension_semantics = [#tpu.dimension_semantics<parallel>], iteration_bounds = array<i64: 1>, scalar_prefetch = 0 : i64, scratch_operands = 0 : i64, tpu.core_type = #tpu.core_type<tc>, window_params = [{transform_indices = @transform_0, window_bounds = array<i64: 4, 24>}, {transform_indices = @transform_1, window_bounds = array<i64: 4, 32>}, {pipeline_mode = #tpu.pipeline_mode<synchronous>, transform_indices = @transform_2, window_bounds = array<i64: 24, 256>}, {pipeline_mode = #tpu.pipeline_mode<synchronous>, transform_indices = @transform_3, window_bounds = array<i64: 32, 256>}, {pipeline_mode = #tpu.pipeline_mode<synchronous>, transform_indices = @transform_4, window_bounds = array<i64: 1, 256>}, {pipeline_mode = #tpu.pipeline_mode<synchronous>, transform_indices = @transform_5, window_bounds = array<i64: 256, 256>}, {pipeline_mode = #tpu.pipeline_mode<synchronous>, transform_indices = @transform_6, window_bounds = array<i64: 1, 256>}, {transform_indices = @transform_7, window_bounds = array<i64: 4, 256>}]} {
    %c0 = arith.constant 0 : index
    %c0_0 = arith.constant 0 : index
    %0 = vector.load %arg1[%c0, %c0_0] : memref<4x24xf32, #tpu.memory_space<vmem>>, vector<4x24xf32>
    %c0_1 = arith.constant 0 : index
    %c0_2 = arith.constant 0 : index
    %1 = vector.load %arg3[%c0_1, %c0_2] : memref<24x256xf32, #tpu.memory_space<vmem>>, vector<24x256xf32>
    %cst = arith.constant dense<0.000000e+00> : vector<4x256xf32>
    %2 = tpu.matmul %0, %1, %cst {dimension_numbers = #tpu.dot_dimension_numbers<[1], [0], [0], [1], [0, 0, 1, 1], [], []>} : vector<4x24xf32>, vector<24x256xf32>, vector<4x256xf32> -> vector<4x256xf32>
    %c0_3 = arith.constant 0 : index
    %c0_4 = arith.constant 0 : index
    %3 = vector.load %arg2[%c0_3, %c0_4] : memref<4x32xf32, #tpu.memory_space<vmem>>, vector<4x32xf32>
    %c0_5 = arith.constant 0 : index
    %c0_6 = arith.constant 0 : index
    %4 = vector.load %arg4[%c0_5, %c0_6] : memref<32x256xf32, #tpu.memory_space<vmem>>, vector<32x256xf32>
    %cst_7 = arith.constant dense<0.000000e+00> : vector<4x256xf32>
    %5 = tpu.matmul %3, %4, %cst_7 {dimension_numbers = #tpu.dot_dimension_numbers<[1], [0], [0], [1], [0, 0, 1, 1], [], []>} : vector<4x32xf32>, vector<32x256xf32>, vector<4x256xf32> -> vector<4x256xf32>
    %6 = arith.addf %2, %5 : vector<4x256xf32>
    %c0_8 = arith.constant 0 : index
    %c0_9 = arith.constant 0 : index
    %7 = vector.load %arg5[%c0_8, %c0_9] : memref<1x256xf32, #tpu.memory_space<vmem>>, vector<1x256xf32>
    %8 = vector.broadcast %7 : vector<1x256xf32> to vector<4x256xf32>
    %9 = arith.addf %6, %8 : vector<4x256xf32>
    %cst_10 = arith.constant 0.000000e+00 : f32
    %10 = vector.broadcast %cst_10 : f32 to vector<4x256xf32>
    %11 = arith.maximumf %9, %10 : vector<4x256xf32>
    %c0_11 = arith.constant 0 : index
    %c0_12 = arith.constant 0 : index
    %12 = vector.load %arg6[%c0_11, %c0_12] : memref<256x256xf32, #tpu.memory_space<vmem>>, vector<256x256xf32>
    %cst_13 = arith.constant dense<0.000000e+00> : vector<4x256xf32>
    %13 = tpu.matmul %11, %12, %cst_13 {dimension_numbers = #tpu.dot_dimension_numbers<[1], [0], [0], [1], [0, 0, 1, 1], [], []>} : vector<4x256xf32>, vector<256x256xf32>, vector<4x256xf32> -> vector<4x256xf32>
    %c0_14 = arith.constant 0 : index
    %c0_15 = arith.constant 0 : index
    %14 = vector.load %arg7[%c0_14, %c0_15] : memref<1x256xf32, #tpu.memory_space<vmem>>, vector<1x256xf32>
    %15 = vector.broadcast %14 : vector<1x256xf32> to vector<4x256xf32>
    %16 = arith.addf %13, %15 : vector<4x256xf32>
    %cst_16 = arith.constant 0.000000e+00 : f32
    %17 = vector.broadcast %cst_16 : f32 to vector<4x256xf32>
    %18 = arith.maximumf %16, %17 : vector<4x256xf32>
    %c0_17 = arith.constant 0 : index
    %c0_18 = arith.constant 0 : index
    %19 = vector.load %arg8[%c0_17, %c0_18] : memref<4x256xf32, #tpu.memory_space<vmem>>, vector<4x256xf32>
    tpu.vector_store %arg8[%c0_17, %c0_18], %18 {strides = array<i32>} : memref<4x256xf32, #tpu.memory_space<vmem>>, vector<4x256xf32>,
    return
  }
  func.func @transform_0(%arg0: i32) -> (i32, i32) {
    %c0_i32 = arith.constant 0 : i32
    %c0_i32_0 = arith.constant 0 : i32
    return %arg0, %c0_i32 : i32, i32
  }
  func.func @transform_1(%arg0: i32) -> (i32, i32) {
    %c0_i32 = arith.constant 0 : i32
    %c0_i32_0 = arith.constant 0 : i32
    return %arg0, %c0_i32 : i32, i32
  }
  func.func @transform_2(%arg0: i32) -> (i32, i32) {
    %c0_i32 = arith.constant 0 : i32
    %c0_i32_0 = arith.constant 0 : i32
    %c0_i32_1 = arith.constant 0 : i32
    return %c0_i32, %c0_i32_0 : i32, i32
  }
  func.func @transform_3(%arg0: i32) -> (i32, i32) {
    %c0_i32 = arith.constant 0 : i32
    %c0_i32_0 = arith.constant 0 : i32
    %c0_i32_1 = arith.constant 0 : i32
    return %c0_i32, %c0_i32_0 : i32, i32
  }
  func.func @transform_4(%arg0: i32) -> (i32, i32) {
    %c0_i32 = arith.constant 0 : i32
    %c0_i32_0 = arith.constant 0 : i32
    %c0_i32_1 = arith.constant 0 : i32
    return %c0_i32, %c0_i32_0 : i32, i32
  }
  func.func @transform_5(%arg0: i32) -> (i32, i32) {
    %c0_i32 = arith.constant 0 : i32
    %c0_i32_0 = arith.constant 0 : i32
    %c0_i32_1 = arith.constant 0 : i32
    return %c0_i32, %c0_i32_0 : i32, i32
  }
  func.func @transform_6(%arg0: i32) -> (i32, i32) {
    %c0_i32 = arith.constant 0 : i32
    %c0_i32_0 = arith.constant 0 : i32
    %c0_i32_1 = arith.constant 0 : i32
    return %c0_i32, %c0_i32_0 : i32, i32
  }
  func.func @transform_7(%arg0: i32) -> (i32, i32) {
    %c0_i32 = arith.constant 0 : i32
    %c0_i32_0 = arith.constant 0 : i32
    return %arg0, %c0_i32 : i32, i32
  }
}

</mosaic_0001>

<bundles_post_ra>
// kernel: tile.13
= control target key start
LH: loop header
LB: loop body
LE: loop exit
PB: predicated region body
PF: predicated region fallthrough
CT: control target
= control target key end

     0   :  { %s22_s0 = inlined_call_operand.vmem [shape: f32[32], index: 0, kind: input, shape index: {}]   ;;  %s23_s1 = inlined_call_operand.vmem [shape: f32[8,32], index: 1, kind: output, shape index: {}]  }
   0x1   :  { %v4_v0 = vld [vmem:[%s22_s0] ss:$0 sm:$0xff] }
   0x2   :  { %5 = vst [vmem:[%s23_s1] sm:$0xff] %v4_v0 }

// kernel: tile.14
= control target key start
LH: loop header
LB: loop body
LE: loop exit
PB: predicated region body
PF: predicated region fallthrough
CT: control target
= control target key end

     0   :  { %s7_s6 = smov 3  ;;  %s14_s9 = smov 3  ;;  %vm4_vm0 = vcmask 261120   ;;  %vm11_vm1 = vcmask 1048320   ;;  %vm18_vm2 = vcmask 785920   ;;  %vm25_vm3 = vcmask 523520   ;;  %s76_s0 = inlined_call_operand.vmem [shape: f32[8,32], index: 0, kind: input, shape index: {}]   ;;  %s77_s1 = inlined_call_operand.vmem [shape: f32[1,256], index: 1, kind: output, shape index: {}]  }
   0x1   :  { %v38_v0 = vld [vmem:[%s76_s0 + $0x3] ss:$4 sm:%s7_s6]   ;;  %s45_s10 = smov 96   ;;  %s21_s11 = smov 3  ;;  %v39_v1 = vld [vmem:[%s76_s0 + $0x2] ss:$4 sm:%s14_s9]  }
   0x2   :  { %9 = vrot.lane.b32.xlu0 %v38_v0, %s45_s10  ;;  %v40_v2 = vld [vmem:[%s76_s0 + $0x1] ss:$4 sm:%s21_s11]   ;;  %s2_s16 = smov 3  ;;  %s46_s17 = smov 32  }
   0x3   :  { %23 = vrot.lane.b32.xlu1 %v40_v2, %s46_s17  ;;  %v3_v3 = vld [vmem:[%s76_s0] ss:$4 sm:%s2_s16]   ;;  %s47_s0 = smov 64  }
   0x4   :  { %5 = vst.msk [vmem:[#allocation0] ss:$8 sm:$0x3] %vm4_vm0, %v3_v3  }
   0x6   :  { %16 = vrot.lane.b32.xlu0 %v39_v1, %s47_s0 }
  0x74   :  { %v10_v4 = vpop.permute.xlu0 %9  }
  0x75   :  { %12 = vst.msk [vmem:[#allocation0] ss:$8 sm:$0x3] %vm11_vm1, %v10_v4   ;;  %v24_v5 = vpop.permute.xlu1 %23  }
  0x78   :  { %v17_v6 = vpop.permute.xlu0 %16  }
  0x79   :  { %19 = vst.msk [vmem:[#allocation0] ss:$8 sm:$0x3] %vm18_vm2, %v17_v6  }
  0x7a   :  { %26 = vst.msk [vmem:[#allocation0] ss:$8 sm:$0x3] %vm25_vm3, %v24_v5  }
  0x81   :  { %v30_v7 = vld [vmem:[#allocation0] sm:$0x1]  ;;  %v34_v8 = vld [vmem:[#allocation0 + $0x8] sm:$0x1] }
  0x82   :  { %32 = vst [vmem:[%s77_s1] sm:$0x1] %v30_v7  ;;  %41 = vst [vmem:[%s77_s1 + $0x1] sm:$0x1] %v34_v8 }

// kernel: transition_down.1
= control target key start
LH: loop header
LB: loop body
LE: loop exit
PB: predicated region body
PF: predicated region fallthrough
CT: control target
= control target key end

     0   :  { %v447_v3 = vmov 0.0   ;;  %vm42_vm0 = vcmask 261120   ;;  %vm117_vm1 = vcmask 195584   ;;  %s737_s3 = inlined_call_operand.vmem [shape: f32[32,256], index: 3, kind: input, shape index: {}]   ;;  %s738_s2 = inlined_call_operand.vmem [shape: f32[24,256], index: 2, kind: input, shape index: {}]   ;;  %s739_s5 = inlined_call_operand.vmem [shape: f32[256,256], index: 5, kind: input, shape index: {}]   ;;  %s740_s1 = inlined_call_operand.vmem [shape: f32[4,32], index: 1, kind: input, shape index: {}]   ;;  %s741_s0 = inlined_call_operand.vmem [shape: f32[4,24], index: 0, kind: input, shape index: {}]   ;;  %s742_s4 = inlined_call_operand.vmem [shape: f32[1,256], index: 4, kind: input, shape index: {}]   ;;  %s743_s6 = inlined_call_operand.vmem [shape: f32[1,256], index: 6, kind: input, shape index: {}]   ;;  %s744_s7 = inlined_call_operand.vmem [shape: f32[4,256], index: 7, kind: output, shape index: {}]  }
   0x1   :  { %v35_v0 = vld [vmem:[%s737_s3 + $0x8] sm:$0xff]  ;;  %v37_v1 = vld [vmem:[%s737_s3 + $0x18] sm:$0xff]  ;;  %v34_v2 = vld [vmem:[%s737_s3] sm:$0xff]  ;;  %110 = vmatprep.mubr.f32.mxu0 %v447_v3 }
   0x2   :  { %v368_v4 = vpack.c.bf16 %v37_v1, %v35_v0  ;;  %v36_v5 = vld [vmem:[%s737_s3 + $0x10] sm:$0xff]  ;;  %v39_v6 = vld [vmem:[%s737_s3 + $0x28] sm:$0xff]  ;;  %v41_v7 = vld [vmem:[%s737_s3 + $0x38] sm:$0xff] }
   0x3   :  { %v370_v8 = vpack.c.bf16 %v36_v5, %v34_v2  ;;  %v372_v9 = vpack.c.bf16 %v41_v7, %v39_v6  ;;  %v38_v10 = vld [vmem:[%s737_s3 + $0x20] sm:$0xff]  ;;  %v40_v11 = vld [vmem:[%s737_s3 + $0x30] sm:$0xff]  ;;  %v28_v12 = vld [vmem:[%s738_s2 + $0x8] sm:$0xff] }
   0x4   :  { %369 = vmatprep.subr.bf16.mxu0 %v368_v4  ;;  %v30_v13 = vld [vmem:[%s738_s2 + $0x18] sm:$0xff]  ;;  %v374_v14 = vpack.c.bf16 %v40_v11, %v38_v10  ;;  %v27_v15 = vld [vmem:[%s738_s2] sm:$0xff]  ;;  %v29_v17 = vld [vmem:[%s738_s2 + $0x10] sm:$0xff] }
   0x5   :  { %371 = vmatpush1.bf16.msra.mxu0 %v370_v8  ;;  %v376_v16 = vpack.c.bf16 %v30_v13, %v28_v12  ;;  %v209_v18 = vld [vmem:[%s739_s5 + $0x8] sm:$0xff]  ;;  %v211_v19 = vld [vmem:[%s739_s5 + $0x18] sm:$0xff]  ;;  %v208_v21 = vld [vmem:[%s739_s5] sm:$0xff]  ;;  %v378_v29 = vpack.c.bf16 %v29_v17, %v27_v15 }
   0x6   :  { %373 = vmatprep.subr.bf16.mxu0 %v372_v9  ;;  %v380_v20 = vpack.c.bf16 %v211_v19, %v209_v18  ;;  %v210_v22 = vld [vmem:[%s739_s5 + $0x10] sm:$0xff]  ;;  %v213_v23 = vld [vmem:[%s739_s5 + $0x28] sm:$0xff]  ;;  %v215_v25 = vld [vmem:[%s739_s5 + $0x38] sm:$0xff] }
   0x7   :  { %v382_v24 = vpack.c.bf16 %v210_v22, %v208_v21  ;;  %v212_v26 = vld [vmem:[%s739_s5 + $0x20] sm:$0xff]  ;;  %v214_v27 = vld [vmem:[%s739_s5 + $0x30] sm:$0xff]  ;;  %v384_v30 = vpack.c.bf16 %v215_v25, %v213_v23  ;;  %v217_v31 = vld [vmem:[%s739_s5 + $0x48] sm:$0xff] }
   0x8   :  { %v33_v28 = vld [vmem:[%s740_s1] sm:$0xf]  ;;  %381 = vmatprep.subr.bf16.mxu1 %v380_v20  ;;  %v219_v32 = vld [vmem:[%s739_s5 + $0x58] sm:$0xff]  ;;  %v386_v33 = vpack.c.bf16 %v214_v27, %v212_v26  ;;  %v32_v34 = vld [vmem:[%s738_s2 + $0x28] sm:$0xff] }
   0x9   :  { %375 = vmatpush1.bf16.msra.mxu0 %v374_v14  ;;  %383 = vmatpush1.bf16.msra.mxu1 %v382_v24  ;;  %v388_v35 = vpack.c.bf16 %v219_v32, %v217_v31  ;;  %v216_v36 = vld [vmem:[%s739_s5 + $0x40] sm:$0xff]  ;;  %v218_v37 = vld [vmem:[%s739_s5 + $0x50] sm:$0xff]  ;;  %v221_v38 = vld [vmem:[%s739_s5 + $0x68] sm:$0xff] }
   0xa   :  { %377 = vmatprep.subr.bf16.mxu0 %v376_v16  ;;  %385 = vmatprep.subr.bf16.mxu1 %v384_v30  ;;  %v223_v39 = vld [vmem:[%s739_s5 + $0x78] sm:$0xff]  ;;  %v31_v40 = vld [vmem:[%s738_s2 + $0x20] sm:$0xff]  ;;  %v390_v41 = vpack.c.bf16 %v218_v37, %v216_v36  ;;  %v222_v44 = vld [vmem:[%s739_s5 + $0x70] sm:$0xff] }
   0xb   :  { %v392_v42 = vpack.c.bf16 %v223_v39, %v221_v38  ;;  %v220_v43 = vld [vmem:[%s739_s5 + $0x60] sm:$0xff]  ;;  %v225_v45 = vld [vmem:[%s739_s5 + $0x88] sm:$0xff]  ;;  %v227_v46 = vld [vmem:[%s739_s5 + $0x98] sm:$0xff] }
   0xc   :  { %366 = vmatmul.mubr.msk.f32.vlgmr.msra.gmra.mrb[0].mxu0 %vm42_vm0, %v33_v28  ;;  %v26_v47 = vld [vmem:[%s741_s0] sm:$0xf]  ;;  %v394_v48 = vpack.c.bf16 %v222_v44, %v220_v43  ;;  %v396_v49 = vpack.c.bf16 %v227_v46, %v225_v45  ;;  %v226_v51 = vld [vmem:[%s739_s5 + $0x90] sm:$0xff]  ;;  %v229_v52 = vld [vmem:[%s739_s5 + $0xa8] sm:$0xff] }
   0xd   :  { %379 = vmatpush1.bf16.msra.mxu0 %v378_v29  ;;  %185 = vmatprep.mubr.f32.mxu0 %v447_v3  ;;  %v224_v50 = vld [vmem:[%s739_s5 + $0x80] sm:$0xff]  ;;  %v231_v53 = vld [vmem:[%s739_s5 + $0xb8] sm:$0xff]  ;;  %v230_v57 = vld [vmem:[%s739_s5 + $0xb0] sm:$0xff] }
   0xe   :  { %125 = vmatprep.subr.mxu0 %v32_v34  ;;  %387 = vmatpush1.bf16.msra.mxu1 %v386_v33  ;;  %v398_v54 = vpack.c.bf16 %v226_v51, %v224_v50  ;;  %v400_v55 = vpack.c.bf16 %v231_v53, %v229_v52  ;;  %v228_v56 = vld [vmem:[%s739_s5 + $0xa0] sm:$0xff]  ;;  %v233_v58 = vld [vmem:[%s739_s5 + $0xc8] sm:$0xff]  ;;  %v235_v59 = vld [vmem:[%s739_s5 + $0xd8] sm:$0xff] }
   0xf   :  { %389 = vmatprep.subr.bf16.mxu1 %v388_v35  ;;  %v402_v60 = vpack.c.bf16 %v230_v57, %v228_v56  ;;  %v404_v61 = vpack.c.bf16 %v235_v59, %v233_v58  ;;  %v232_v62 = vld [vmem:[%s739_s5 + $0xc0] sm:$0xff]  ;;  %v234_v63 = vld [vmem:[%s739_s5 + $0xd0] sm:$0xff]  ;;  %v237_v0 = vld [vmem:[%s739_s5 + $0xe8] sm:$0xff] }
  0x10   :  { %v239_v1 = vld [vmem:[%s739_s5 + $0xf8] sm:$0xff]  ;;  %v406_v2 = vpack.c.bf16 %v234_v63, %v232_v62  ;;  %v236_v4 = vld [vmem:[%s739_s5 + $0xe0] sm:$0xff]  ;;  %v238_v5 = vld [vmem:[%s739_s5 + $0xf0] sm:$0xff] }
  0x11   :  { %126 = vmatpush1.msra.mxu0 %v31_v40  ;;  %v408_v3 = vpack.c.bf16 %v239_v1, %v237_v0  ;;  %v241_v6 = vld [vmem:[%s739_s5 + $0x108] sm:$0xff]  ;;  %v243_v7 = vld [vmem:[%s739_s5 + $0x118] sm:$0xff]  ;;  %v410_v8 = vpack.c.bf16 %v238_v5, %v236_v4  ;;  %v240_v10 = vld [vmem:[%s739_s5 + $0x100] sm:$0xff] }
  0x12   :  { %391 = vmatpush1.bf16.msra.mxu1 %v390_v41  ;;  %v412_v9 = vpack.c.bf16 %v243_v7, %v241_v6  ;;  %v242_v11 = vld [vmem:[%s739_s5 + $0x110] sm:$0xff]  ;;  %v245_v12 = vld [vmem:[%s739_s5 + $0x128] sm:$0xff]  ;;  %v247_v13 = vld [vmem:[%s739_s5 + $0x138] sm:$0xff] }
  0x13   :  { %393 = vmatprep.subr.bf16.mxu1 %v392_v42  ;;  %v414_v14 = vpack.c.bf16 %v242_v11, %v240_v10  ;;  %v416_v15 = vpack.c.bf16 %v247_v13, %v245_v12  ;;  %v244_v16 = vld [vmem:[%s739_s5 + $0x120] sm:$0xff]  ;;  %v246_v17 = vld [vmem:[%s739_s5 + $0x130] sm:$0xff]  ;;  %v249_v18 = vld [vmem:[%s739_s5 + $0x148] sm:$0xff] }
  0x14   :  { %367 = vmatmul.mubr.msk.f32.vlgmr.msra.gmra.mrb[0].mxu0 %vm117_vm1, %v26_v47  ;;  %v251_v19 = vld [vmem:[%s739_s5 + $0x158] sm:$0xff]  ;;  %v418_v20 = vpack.c.bf16 %v246_v17, %v244_v16  ;;  %v248_v22 = vld [vmem:[%s739_s5 + $0x140] sm:$0xff]  ;;  %v250_v23 = vld [vmem:[%s739_s5 + $0x150] sm:$0xff] }
  0x15   :  { %v420_v21 = vpack.c.bf16 %v251_v19, %v249_v18  ;;  %v253_v24 = vld [vmem:[%s739_s5 + $0x168] sm:$0xff]  ;;  %v255_v25 = vld [vmem:[%s739_s5 + $0x178] sm:$0xff]  ;;  %v422_v26 = vpack.c.bf16 %v250_v23, %v248_v22  ;;  %v252_v28 = vld [vmem:[%s739_s5 + $0x160] sm:$0xff] }
  0x16   :  { %395 = vmatpush1.bf16.msra.mxu1 %v394_v48  ;;  %v424_v27 = vpack.c.bf16 %v255_v25, %v253_v24  ;;  %v254_v29 = vld [vmem:[%s739_s5 + $0x170] sm:$0xff]  ;;  %v257_v30 = vld [vmem:[%s739_s5 + $0x188] sm:$0xff]  ;;  %v259_v31 = vld [vmem:[%s739_s5 + $0x198] sm:$0xff] }
  0x17   :  { %397 = vmatprep.subr.bf16.mxu1 %v396_v49  ;;  %v426_v32 = vpack.c.bf16 %v254_v29, %v252_v28  ;;  %v428_v33 = vpack.c.bf16 %v259_v31, %v257_v30  ;;  %v256_v34 = vld [vmem:[%s739_s5 + $0x180] sm:$0xff]  ;;  %v258_v35 = vld [vmem:[%s739_s5 + $0x190] sm:$0xff]  ;;  %v261_v36 = vld [vmem:[%s739_s5 + $0x1a8] sm:$0xff] }
  0x18   :  { %v263_v37 = vld [vmem:[%s739_s5 + $0x1b8] sm:$0xff]  ;;  %v430_v38 = vpack.c.bf16 %v258_v35, %v256_v34  ;;  %v260_v40 = vld [vmem:[%s739_s5 + $0x1a0] sm:$0xff]  ;;  %v262_v41 = vld [vmem:[%s739_s5 + $0x1b0] sm:$0xff] }
  0x19   :  { %v432_v39 = vpack.c.bf16 %v263_v37, %v261_v36  ;;  %v265_v42 = vld [vmem:[%s739_s5 + $0x1c8] sm:$0xff]  ;;  %v267_v43 = vld [vmem:[%s739_s5 + $0x1d8] sm:$0xff]  ;;  %v434_v44 = vpack.c.bf16 %v262_v41, %v260_v40  ;;  %v264_v46 = vld [vmem:[%s739_s5 + $0x1c0] sm:$0xff] }
  0x1a   :  { %399 = vmatpush1.bf16.msra.mxu1 %v398_v54  ;;  %v436_v45 = vpack.c.bf16 %v267_v43, %v265_v42  ;;  %v266_v47 = vld [vmem:[%s739_s5 + $0x1d0] sm:$0xff]  ;;  %v269_v49 = vld [vmem:[%s739_s5 + $0x1e8] sm:$0xff]  ;;  %v271_v50 = vld [vmem:[%s739_s5 + $0x1f8] sm:$0xff] }
  0x1b   :  { %401 = vmatprep.subr.bf16.mxu1 %v400_v55  ;;  %v438_v48 = vpack.c.bf16 %v266_v47, %v264_v46  ;;  %v440_v51 = vpack.c.bf16 %v271_v50, %v269_v49  ;;  %v268_v52 = vld [vmem:[%s739_s5 + $0x1e0] sm:$0xff]  ;;  %v270_v53 = vld [vmem:[%s739_s5 + $0x1f0] sm:$0xff]  ;;  %v194_v55 = vlaneseq }
  0x1c   :  { %v442_v54 = vpack.c.bf16 %v270_v53, %v268_v52  ;;  %v192_v58 = vld [vmem:[%s742_s4] sm:$0x3] }
  0x1d   :  { %v195_v56 = vshrl.u32 %v194_v55, 7  ;;  %v272_v4 = vld [vmem:[%s743_s6] sm:$0x3] }
  0x1e   :  { %403 = vmatpush1.bf16.msra.mxu1 %v402_v60 }
  0x1f   :  { %405 = vmatprep.subr.bf16.mxu1 %v404_v61  ;;  %v196_v57 = vsub.s32 0, %v195_v56  ;;  %v200_v59 = vsub.s32 1, %v195_v56 }
  0x21   :  { %v197_v60 = vrot.slane %v192_v58, %v196_v57  ;;  %v201_v61 = vrot.slane %v192_v58, %v200_v59  ;;  %v277_v5 = vrot.slane %v272_v4, %v196_v57  ;;  %v281_v6 = vrot.slane %v272_v4, %v200_v59 }
  0x22   :  { %407 = vmatpush1.bf16.msra.mxu1 %v406_v2 }
  0x23   :  { %409 = vmatprep.subr.bf16.mxu1 %v408_v3 }
  0x26   :  { %411 = vmatpush1.bf16.msra.mxu1 %v410_v8 }
  0x27   :  { %413 = vmatprep.subr.bf16.mxu1 %v412_v9 }
  0x2a   :  { %415 = vmatpush1.bf16.msra.mxu1 %v414_v14 }
  0x2b   :  { %417 = vmatprep.subr.bf16.mxu1 %v416_v15 }
  0x2e   :  { %419 = vmatpush1.bf16.msra.mxu1 %v418_v20 }
  0x2f   :  { %421 = vmatprep.subr.bf16.mxu1 %v420_v21 }
  0x32   :  { %423 = vmatpush1.bf16.msra.mxu1 %v422_v26 }
  0x33   :  { %425 = vmatprep.subr.bf16.mxu1 %v424_v27 }
  0x36   :  { %427 = vmatpush1.bf16.msra.mxu1 %v426_v32 }
  0x37   :  { %429 = vmatprep.subr.bf16.mxu1 %v428_v33 }
  0x3a   :  { %431 = vmatpush1.bf16.msra.mxu1 %v430_v38 }
  0x3b   :  { %433 = vmatprep.subr.bf16.mxu1 %v432_v39 }
  0x3e   :  { %435 = vmatpush1.bf16.msra.mxu1 %v434_v44 }
  0x3f   :  { %437 = vmatprep.subr.bf16.mxu1 %v436_v45 }
  0x42   :  { %439 = vmatpush1.bf16.msra.mxu1 %v438_v48 }
  0x43   :  { %441 = vmatprep.subr.bf16.mxu1 %v440_v51 }
  0x46   :  { %443 = vmatpush1.bf16.msra.mxu1 %v442_v54 }
  0xe7   :  { %v187_v62 = vpop.f32.mrb[0].mxu0 }
  0xe8   :  { %v204_v63 = vadd.f32 %v197_v60, %v187_v62  ;;  %v189_v0 = vpop.f32.mrb[1].mxu0 }
  0xe9   :  { %v205_v1 = vadd.f32 %v201_v61, %v189_v0 }
  0xea   :  { %v206_v3 = vmax.f32 %v204_v63, 0.0 }
  0xeb   :  { %v207_v2 = vmax.f32 %v205_v1, 0.0 }
  0xed   :  { %348 = vmatprep.mubr.f32.mxu1 %v207_v2 }
  0xee   :  { %349 = vmatmul.mubr.f32.vlgmr.msra.gmra.mrb[0].mxu1 %v206_v3 }
 0x1c1   :  { %v350_v7 = vpop.f32.mrb[0].mxu1 }
 0x1c2   :  { %v351_v8 = vadd.f32 %v350_v7, %v277_v5  ;;  %v352_v9 = vpop.f32.mrb[1].mxu1 }
 0x1c3   :  { %v353_v10 = vadd.f32 %v352_v9, %v281_v6 }
 0x1c4   :  { %v355_v11 = vmax.f32 %v351_v8, 0.0 }
 0x1c5   :  { %v356_v12 = vmax.f32 %v353_v10, 0.0 }
 0x1c7   :  { %v359_v13 = vcombine.low %v355_v11, %v356_v12 }
 0x1c9   :  { %361 = vst [vmem:[%s744_s7] sm:$0xff] %v359_v13 }

</bundles_post_ra>
